<compile_context>
chip_gen: v7x
topology: tpu7x:2x2x1
jax: 0.10.0
libtpu: 0.0.40
codegen_flags: <defaults>
</compile_context>

<pallas_src>
import functools

import jax
import jax.numpy as jnp
from jax.experimental import pallas as pl
from jax.experimental.pallas import tpu as pltpu

LN_EPS = 1e-5  # nn.LayerNorm default


def _round_up(x, m):
    return ((x + m - 1) // m) * m


def linear_bn_kernel(x_ref, gamma_ref, beta_ref, w_ref, b_ref, o_ref, xn_ref, *, act):
    # --- LayerNorm: computed once per batch tile (j == 0), cached in VMEM ---
    @pl.when(pl.program_id(1) == 0)
    def _():
        x = x_ref[...].astype(jnp.float32)                    # (tm, IN)
        mean = jnp.mean(x, axis=-1, keepdims=True)
        xc = x - mean
        var = jnp.mean(xc * xc, axis=-1, keepdims=True)       # two-pass: stable
        xn = xc * jax.lax.rsqrt(var + LN_EPS)
        xn = (xn * gamma_ref[...].astype(jnp.float32)
              + beta_ref[...].astype(jnp.float32))
        # Cache in the MXU-feed (weight) dtype so the matmul below needs no cast.
        xn_ref[...] = xn.astype(xn_ref.dtype)

    # --- Linear: cached activations @ weight tile, f32 accumulation ---
    y = jnp.dot(xn_ref[...], w_ref[...], preferred_element_type=jnp.float32)
    y = y + b_ref[...].astype(jnp.float32)
    if act is not None:                                       # act=None -> identity
        y = act(y)
    o_ref[...] = y.astype(o_ref.dtype)


def linear_bn(x, gamma, beta, weight_t, bias, *, act=None, tm=512, tn=256):
    """x: (B, IN); gamma/beta: (IN,); weight_t: (IN, OUT); bias: (OUT,).

    `act` (optional) must be a jnp-traceable elementwise callable.
    """
    B, IN = x.shape
    OUT = weight_t.shape[1]

    s_x = jnp.dtype(x.dtype).itemsize
    s_w = jnp.dtype(weight_t.dtype).itemsize
    s_o = s_x  # output keeps x's dtype

    # Sublane packing: bf16 packs 16 rows / 8-bit packs 32 rows per vreg tile.
    row_align = 32 if s_x == 1 else (16 if s_x == 2 else 8)

    # Batch tile: big for arithmetic intensity (weight streaming ~ tm FLOPs/byte),
    # capped at the (aligned) batch, rounded to the sublane packing.
    tm = min(tm, _round_up(B, row_align))
    tm = _round_up(tm, row_align)

    # Out tile: lane-dense multiple of 128, capped at the padded OUT.
    tn = min(tn, _round_up(OUT, 128))
    tn = _round_up(tn, 128)

    # Fit the double-buffered tile set + xn scratch into a conservative VMEM
    # budget (safe on v7x's 64 MiB physical VMEM; v5e/v6e have 128 MiB).
    vmem_budget = 40 * 1024 * 1024

    def _vmem_estimate(tm_):
        return (2 * tm_ * IN * s_x        # x double buffer
                + 2 * IN * tn * s_w       # weight double buffer
                + 2 * tm_ * tn * s_o      # out double buffer
                + tm_ * IN * s_w          # xn scratch (single, persistent)
                + 4 * IN * 4 + 2 * tn * 4)  # gamma/beta/bias

    while tm > row_align and _vmem_estimate(tm) > vmem_budget:
        tm = max(row_align, _round_up(tm // 2, row_align))
    # TODO(synk): for very large IN (>= 8-16K) a K (IN) grid axis with an f32
    # accumulator would be needed instead of shrinking tm.

    gamma2 = gamma.reshape(1, IN)
    beta2 = beta.reshape(1, IN)
    bias2 = bias.reshape(1, OUT)

    # Partial edge blocks handled by Pallas: OOB reads stay row/column-local,
    # OOB writes are dropped, so no wrapper-side padding / slicing is needed.
    grid = (pl.cdiv(B, tm), pl.cdiv(OUT, tn))

    # NOTE: if accuracy allows, cast f32 weights to bf16 on the caller side to
    # hit the native bf16 MXU path (f32 matmul is a multi-pass emulation).
    out = pl.pallas_call(
        functools.partial(linear_bn_kernel, act=act),
        out_shape=jax.ShapeDtypeStruct((B, OUT), x.dtype),
        grid_spec=pltpu.PrefetchScalarGridSpec(
            num_scalar_prefetch=0,
            grid=grid,
            in_specs=[
                pl.BlockSpec((tm, IN), lambda i, j: (i, 0)),    # x batch tile
                pl.BlockSpec((1, IN), lambda i, j: (0, 0)),     # gamma
                pl.BlockSpec((1, IN), lambda i, j: (0, 0)),     # beta
                pl.BlockSpec((IN, tn), lambda i, j: (0, j)),    # weight (IN, tn)
                pl.BlockSpec((1, tn), lambda i, j: (0, j)),     # bias tile
            ],
            out_specs=pl.BlockSpec((tm, tn), lambda i, j: (i, j)),
            scratch_shapes=[pltpu.VMEM((tm, IN), weight_t.dtype)],  # cached xn
        ),
        compiler_params=pltpu.CompilerParams(
            # j carries the xn cache -> must be "arbitrary"; i stays parallel
            # (each TensorCore has its own VMEM scratch).
            dimension_semantics=("parallel", "arbitrary"),
            vmem_limit_bytes=48 * 1024 * 1024,
        ),
    )(x, gamma2, beta2, weight_t, bias2)

    return out


def reference(x, gamma, beta, weight_t, bias):
    xf = x.astype(jnp.float32)
    mean = jnp.mean(xf, axis=-1, keepdims=True)
    var = jnp.mean((xf - mean) ** 2, axis=-1, keepdims=True)
    xn = (xf - mean) / jnp.sqrt(var + LN_EPS)
    xn = xn * gamma + beta
    return xn @ weight_t.astype(jnp.float32) + bias


if __name__ == "__main__":
    key = jax.random.PRNGKey(0)
    # Ragged small shapes: exercise partial batch / out blocks and the 2-D grid.
    B, IN, OUT = 200, 96, 200

    k_x, k_w, k_b = jax.random.split(key, 3)
    x = jax.random.normal(k_x, (B, IN), dtype=jnp.float32) + 3.0  # non-zero mean

    # Deterministic synthetic parameters (PyTorch-style init).
    gamma = jnp.ones((IN,), dtype=jnp.float32) * 1.1
    beta = jnp.full((IN,), 0.05, dtype=jnp.float32)
    bound = 1.0 / (IN ** 0.5)
    weight_t = jax.random.uniform(k_w, (IN, OUT), minval=-bound, maxval=bound,
                                  dtype=jnp.float32)
    bias = jax.random.uniform(k_b, (OUT,), minval=-bound, maxval=bound,
                              dtype=jnp.float32)

    ref = reference(x, gamma, beta, weight_t, bias)

    # f32 path; small explicit tiles so the 2-D grid (4 x 2, with partial edge
    # blocks) and the j-cached LayerNorm are exercised at this demo size.
    out = linear_bn(x, gamma, beta, weight_t, bias, tm=64, tn=128)
    out = jax.block_until_ready(out)
    assert out.shape == (B, OUT)
    assert jnp.allclose(out, ref, atol=1e-4, rtol=1e-4)

    # Optional activation (ReLU) applied inside the kernel.
    out_act = linear_bn(x, gamma, beta, weight_t, bias,
                        act=lambda y: jnp.maximum(y, 0.0), tm=64, tn=128)
    out_act = jax.block_until_ready(out_act)
    assert jnp.allclose(out_act, jnp.maximum(ref, 0.0), atol=1e-4, rtol=1e-4)

    # bf16 fast path: LayerNorm in f32, MXU fed bf16 activations/weights,
    # f32 accumulation (default large tiles, single-block grid at this size).
    out_bf16 = linear_bn(x.astype(jnp.bfloat16), gamma, beta,
                         weight_t.astype(jnp.bfloat16), bias)
    out_bf16 = jax.block_until_ready(out_bf16)
    assert out_bf16.shape == (B, OUT)
    assert jnp.allclose(out_bf16.astype(jnp.float32), ref, atol=2e-1, rtol=5e-2)

    # TODO(synk): arbitrary torch activation objects must be re-expressed as a
    # jnp-traceable callable and passed via `act=`.
    print("KERNEL_OK")
</pallas_src>

<mosaic_0001>
module attributes {stable_mosaic.version = 11 : i64} {
  func.func @linear_bn_kernel(%arg0: i32, %arg1: i32, %arg2: memref<64x96xf32, #tpu.memory_space<vmem>>, %arg3: memref<1x96xf32, #tpu.memory_space<vmem>>, %arg4: memref<1x96xf32, #tpu.memory_space<vmem>>, %arg5: memref<96x128xf32, #tpu.memory_space<vmem>>, %arg6: memref<1x128xf32, #tpu.memory_space<vmem>>, %arg7: memref<64x128xf32, #tpu.memory_space<vmem>>, %arg8: memref<64x96xf32, #tpu.memory_space<vmem>>) attributes {dimension_semantics = [#tpu.dimension_semantics<parallel>, #tpu.dimension_semantics<arbitrary>], iteration_bounds = array<i64: 4, 2>, scalar_prefetch = 0 : i64, scratch_operands = 1 : i64, tpu.core_type = #tpu.core_type<tc>, window_params = [{transform_indices = @transform_0, window_bounds = array<i64: 64, 96>}, {pipeline_mode = #tpu.pipeline_mode<synchronous>, transform_indices = @transform_1, window_bounds = array<i64: 1, 96>}, {pipeline_mode = #tpu.pipeline_mode<synchronous>, transform_indices = @transform_2, window_bounds = array<i64: 1, 96>}, {transform_indices = @transform_3, window_bounds = array<i64: 96, 128>}, {transform_indices = @transform_4, window_bounds = array<i64: 1, 128>}, {transform_indices = @transform_5, window_bounds = array<i64: 64, 128>}]} {
    %c0_i32 = arith.constant 0 : i32
    %0 = arith.cmpi eq, %arg1, %c0_i32 : i32
    %1 = arith.extui %0 : i1 to i32
    %c0_i32_0 = arith.constant 0 : i32
    %2 = arith.cmpi ne, %1, %c0_i32_0 : i32
    scf.if %2 {
      %c0_8 = arith.constant 0 : index
      %c0_9 = arith.constant 0 : index
      %10 = vector.load %arg2[%c0_8, %c0_9] : memref<64x96xf32, #tpu.memory_space<vmem>>, vector<64x96xf32>
      %cst_10 = arith.constant dense<0.000000e+00> : vector<64xf32>
      %11 = vector.multi_reduction <add>, %10, %cst_10 [1] : vector<64x96xf32> to vector<64xf32>
      %12 = vector.shape_cast %11 : vector<64xf32> to vector<64x1xf32>
      %cst_11 = arith.constant 9.600000e+01 : f32
      %13 = vector.broadcast %cst_11 : f32 to vector<64x1xf32>
      %14 = arith.divf %12, %13 : vector<64x1xf32>
      %15 = vector.broadcast %14 : vector<64x1xf32> to vector<64x96xf32>
      %16 = arith.subf %10, %15 : vector<64x96xf32>
      %17 = arith.mulf %16, %16 : vector<64x96xf32>
      %cst_12 = arith.constant dense<0.000000e+00> : vector<64xf32>
      %18 = vector.multi_reduction <add>, %17, %cst_12 [1] : vector<64x96xf32> to vector<64xf32>
      %19 = vector.shape_cast %18 : vector<64xf32> to vector<64x1xf32>
      %cst_13 = arith.constant 9.600000e+01 : f32
      %20 = vector.broadcast %cst_13 : f32 to vector<64x1xf32>
      %21 = arith.divf %19, %20 : vector<64x1xf32>
      %cst_14 = arith.constant 9.99999974E-6 : f32
      %22 = vector.broadcast %cst_14 : f32 to vector<64x1xf32>
      %23 = arith.addf %21, %22 : vector<64x1xf32>
      %24 = math.rsqrt %23 : vector<64x1xf32>
      %25 = vector.broadcast %24 : vector<64x1xf32> to vector<64x96xf32>
      %26 = arith.mulf %16, %25 : vector<64x96xf32>
      %c0_15 = arith.constant 0 : index
      %c0_16 = arith.constant 0 : index
      %27 = vector.load %arg3[%c0_15, %c0_16] : memref<1x96xf32, #tpu.memory_space<vmem>>, vector<1x96xf32>
      %28 = vector.broadcast %27 : vector<1x96xf32> to vector<64x96xf32>
      %29 = arith.mulf %26, %28 : vector<64x96xf32>
      %c0_17 = arith.constant 0 : index
      %c0_18 = arith.constant 0 : index
      %30 = vector.load %arg4[%c0_17, %c0_18] : memref<1x96xf32, #tpu.memory_space<vmem>>, vector<1x96xf32>
      %31 = vector.broadcast %30 : vector<1x96xf32> to vector<64x96xf32>
      %32 = arith.addf %29, %31 : vector<64x96xf32>
      %c0_19 = arith.constant 0 : index
      %c0_20 = arith.constant 0 : index
      %33 = vector.load %arg8[%c0_19, %c0_20] : memref<64x96xf32, #tpu.memory_space<vmem>>, vector<64x96xf32>
      tpu.vector_store %arg8[%c0_19, %c0_20], %32 {strides = array<i32>} : memref<64x96xf32, #tpu.memory_space<vmem>>, vector<64x96xf32>,
    } else {
    }
    %c0 = arith.constant 0 : index
    %c0_1 = arith.constant 0 : index
    %3 = vector.load %arg8[%c0, %c0_1] : memref<64x96xf32, #tpu.memory_space<vmem>>, vector<64x96xf32>
    %c0_2 = arith.constant 0 : index
    %c0_3 = arith.constant 0 : index
    %4 = vector.load %arg5[%c0_2, %c0_3] : memref<96x128xf32, #tpu.memory_space<vmem>>, vector<96x128xf32>
    %cst = arith.constant dense<0.000000e+00> : vector<64x128xf32>
    %5 = tpu.matmul %3, %4, %cst {dimension_numbers = #tpu.dot_dimension_numbers<[1], [0], [0], [1], [0, 0, 1, 1], [], []>} : vector<64x96xf32>, vector<96x128xf32>, vector<64x128xf32> -> vector<64x128xf32>
    %c0_4 = arith.constant 0 : index
    %c0_5 = arith.constant 0 : index
    %6 = vector.load %arg6[%c0_4, %c0_5] : memref<1x128xf32, #tpu.memory_space<vmem>>, vector<1x128xf32>
    %7 = vector.broadcast %6 : vector<1x128xf32> to vector<64x128xf32>
    %8 = arith.addf %5, %7 : vector<64x128xf32>
    %c0_6 = arith.constant 0 : index
    %c0_7 = arith.constant 0 : index
    %9 = vector.load %arg7[%c0_6, %c0_7] : memref<64x128xf32, #tpu.memory_space<vmem>>, vector<64x128xf32>
    tpu.vector_store %arg7[%c0_6, %c0_7], %8 {strides = array<i32>} : memref<64x128xf32, #tpu.memory_space<vmem>>, vector<64x128xf32>,
    return
  }
  func.func @transform_0(%arg0: i32, %arg1: i32) -> (i32, i32) {
    %c0_i32 = arith.constant 0 : i32
    %c0_i32_0 = arith.constant 0 : i32
    return %arg0, %c0_i32 : i32, i32
  }
  func.func @transform_1(%arg0: i32, %arg1: i32) -> (i32, i32) {
    %c0_i32 = arith.constant 0 : i32
    %c0_i32_0 = arith.constant 0 : i32
    %c0_i32_1 = arith.constant 0 : i32
    return %c0_i32, %c0_i32_0 : i32, i32
  }
  func.func @transform_2(%arg0: i32, %arg1: i32) -> (i32, i32) {
    %c0_i32 = arith.constant 0 : i32
    %c0_i32_0 = arith.constant 0 : i32
    %c0_i32_1 = arith.constant 0 : i32
    return %c0_i32, %c0_i32_0 : i32, i32
  }
  func.func @transform_3(%arg0: i32, %arg1: i32) -> (i32, i32) {
    %c0_i32 = arith.constant 0 : i32
    %c0_i32_0 = arith.constant 0 : i32
    return %c0_i32, %arg1 : i32, i32
  }
  func.func @transform_4(%arg0: i32, %arg1: i32) -> (i32, i32) {
    %c0_i32 = arith.constant 0 : i32
    %c0_i32_0 = arith.constant 0 : i32
    return %c0_i32, %arg1 : i32, i32
  }
  func.func @transform_5(%arg0: i32, %arg1: i32) -> (i32, i32) {
    %c0_i32 = arith.constant 0 : i32
    return %arg0, %arg1 : i32, i32
  }
}

</mosaic_0001>

<bundles_post_ra>
// kernel: tpu_custom_call.1
= control target key start
LH: loop header
LB: loop body
LE: loop exit
PB: predicated region body
PF: predicated region fallthrough
CT: control target
= control target key end

     0   :  { %s1507_s0 = inlined_call_operand.vmem [shape: f32[200,96], index: 0, kind: input, shape index: {}]   ;;  %s1508_s1 = inlined_call_operand.vmem [shape: f32[1,96], index: 1, kind: input, shape index: {}]   ;;  %s1509_s2 = inlined_call_operand.vmem [shape: f32[1,96], index: 2, kind: input, shape index: {}]   ;;  %s1510_s3 = inlined_call_operand.vmem [shape: f32[96,200], index: 3, kind: input, shape index: {}]   ;;  %s1511_s4 = inlined_call_operand.vmem [shape: f32[1,200], index: 4, kind: input, shape index: {}]   ;;  %s1512_s5 = inlined_call_operand.hbm [shape: f32[200,200], index: 5, kind: output, shape index: {}]  }
   0x1   :  { %1517 = sst [smem:[#allocation10_spill]] %s1510_s3 }
   0x2   :  { %10 = vsyncpa [#allocation5], 0 }
   0x3   :  { %12 = vsyncpa [#allocation5 + $0x1], 0  ;;  %s1198_s18 = smov 0   ;;  %s1200_s19 = smov 0  }
   0x4   :  { %s1202_s20 = smov 0   ;;  %s1204_s21 = smov 0  }
   0x5   :  { %s1206_s22 = smov 0   ;;  %s1208_s23 = smov 0  }
   0x6   :  { %s1210_s24 = smov 0   ;;  %s1212_s25 = smov 0  }
   0x7   :  { %s1214_s26 = smov 0   ;;  %s1216_s27 = smov 0  }
   0x8 LB: > { %1518 = sst [smem:[#allocation7_spill]] %s1158_s26  ;;  %s821_s28 = sadd.s32 4294967295, %s1162_s27   ;;  %s1162_s27 = sphi %s1216_s27, %s18_s27   ;;  %s1158_s26 = sphi %s1214_s26, %s1528_s26   ;;  %s1154_s25 = sphi %s1212_s25, %s1535_s25   ;;  %s1150_s24 = sphi %s1210_s24, %s1526_s24   ;;  %s1146_s23 = sphi %s1208_s23, %s1534_s23   ;;  %s1142_s22 = sphi %s1206_s22, %s1533_s22   ;;  %s1138_s21 = sphi %s1204_s21, %s1532_s21   ;;  %s1134_s20 = sphi %s1202_s20, %s1531_s20   ;;  %s1130_s19 = sphi %s1200_s19, %s1530_s19   ;;  %s1126_s18 = sphi %s1198_s18, %s1529_s18  }
   0x9   : > { %s822_s29 = sadd.s32 4294967294, %s1162_s27   ;;  %s27_s30 = sadd.s32 1, %s1154_s25 }
   0xa   : > { %s30_s6 = sadd.s32 1, %s1158_s26  ;;  %p28_p0 = scmp.ge.s32.totalorder %s27_s30, 2 }
   0xb   : > { %s105_s7 = sadd.s32 1, %s1142_s22  ;;  %p112_p1 = scmp.ne.s32.totalorder %s1142_s22, %s1138_s21 }
   0xc   : > { %p113_p2 = scmp.eq.s32.totalorder %s1162_s27, 0  ;;  %s1537_s30 = smov (%p28_p0, %s27_s30), 0 }
   0xd   : > { %1519 = sst [smem:[#allocation8_spill]] %s1537_s30  ;;  %s1539_s6 = smov (!%p28_p0, %s30_s6), %s1158_s26 }
   0xe   : > { %s102_s8 = ssub.s32 %s1154_s25, %s1537_s30  ;;  %p1261_p3 = por %p113_p2, %p112_p1 }
   0xf   : > { %p32_p4 = scmp.ge.s32.totalorder %s1539_s6, 4  ;;  %p103_p5 = scmp.eq.s32.totalorder %s102_s8, 0 }
  0x10   : > { %s159_s10 = sadd.s32 1, %s1134_s20  ;;  %p169_p6 = scmp.ne.s32.totalorder %s1134_s20, %s1130_s19 }
  0x11   : > { %s1541_s6 = smov (%p32_p4, %s1539_s6), 0  ;;  %p170_p7 = scmp.eq.s32.totalorder %s821_s28, 7 }
  0x12   : > { %1521 = sst [smem:[#allocation9_spill]] %s1541_s6  ;;  %s154_s12 = ssub.s32 %s1158_s26, %s1541_s6 }
  0x13   : > { %s1271_s11 = scalar_select %p103_p5, %s1142_s22, %s105_s7  }
  0x14   : > { %s156_s13 = sor.u32 %s154_s12, %s102_s8  ;;  %p175_p8 = scmp.ne.s32.totalorder %s1130_s19, %s1126_s18 }
  0x15   : > { %p157_p9 = scmp.eq.s32.totalorder %s156_s13, 0  ;;  %p1277_p10 = por %p170_p7, %p169_p6 }
  0x16   : > { %p176_p11 = scmp.eq.s32.totalorder %s822_s29, 7  ;;  %p824_p13 = scmp.ge.s32.totalorder %s1162_s27, 8 }
  0x17   : > { %s1282_s15 = scalar_select %p157_p9, %s1134_s20, %s159_s10  }
  0x18   : > { %p1284_p12 = por %p176_p11, %p175_p8  ;;  %198 = sbr.rel (%p824_p13) target bundleno = 47 (0x2f), region = 24 }
  0x1f   : > { %218 = sbr.rel (!%p1261_p3) target bundleno = 47 (0x2f), region = 32  ;;  %s220_s17 = sand.u32 (%p1261_p3), 1, %s1142_s22  }
  0x20   : > { %s825_s28 = sshll.u32 (%p1261_p3), %s1154_s25, 3  ;;  %s945_s7 = smul.u32 (%p1261_p3), 96, %s220_s17 }
  0x21   : > { %s1524_s3 = sld [smem:[#allocation10_spill]] (%p1261_p3) }
  0x22   : > { %s222_s10 = scalar_lea.vmem (%p1261_p3), [#allocation3], %s945_s7 }
  0x27   : > { %s224_s29 = scalar_lea.vmem %s1524_s3, %s825_s28 }
  0x28   : > { %v274_v0 = vld [vmem:[%s224_s29] sm:$0xff]  ;;  %v276_v1 = vld [vmem:[%s224_s29 + $0x10] sm:$0xff] }
  0x29   : > { %v278_v2 = vld [vmem:[%s224_s29 + $0x20] sm:$0xff]  ;;  %v280_v3 = vld [vmem:[%s224_s29 + $0x30] sm:$0xff]  ;;  %275 = vst [vmem:[%s222_s10] sm:$0xff] %v274_v0  ;;  %277 = vst [vmem:[%s222_s10 + $0x8] sm:$0xff] %v276_v1 }
  0x2a   : > { %v282_v4 = vld [vmem:[%s224_s29 + $0x40] sm:$0xff]  ;;  %v284_v5 = vld [vmem:[%s224_s29 + $0x50] sm:$0xff]  ;;  %279 = vst [vmem:[%s222_s10 + $0x10] sm:$0xff] %v278_v2  ;;  %281 = vst [vmem:[%s222_s10 + $0x18] sm:$0xff] %v280_v3 }
  0x2b   : > { %283 = vst [vmem:[%s222_s10 + $0x20] sm:$0xff] %v282_v4  ;;  %285 = vst [vmem:[%s222_s10 + $0x28] sm:$0xff] %v284_v5  ;;  %v286_v6 = vld [vmem:[%s224_s29 + $0x60] sm:$0xff]  ;;  %v288_v7 = vld [vmem:[%s224_s29 + $0x70] sm:$0xff] }
  0x2c   : > { %v290_v8 = vld [vmem:[%s224_s29 + $0x80] sm:$0xff]  ;;  %287 = vst [vmem:[%s222_s10 + $0x30] sm:$0xff] %v286_v6  ;;  %289 = vst [vmem:[%s222_s10 + $0x38] sm:$0xff] %v288_v7  ;;  %v292_v9 = vld [vmem:[%s224_s29 + $0x90] sm:$0xff] }
  0x2d   : > { %291 = vst [vmem:[%s222_s10 + $0x40] sm:$0xff] %v290_v8  ;;  %v294_v10 = vld [vmem:[%s224_s29 + $0xa0] sm:$0xff]  ;;  %v296_v11 = vld [vmem:[%s224_s29 + $0xb0] sm:$0xff]  ;;  %293 = vst [vmem:[%s222_s10 + $0x48] sm:$0xff] %v292_v9 }
  0x2e   : > { %295 = vst [vmem:[%s222_s10 + $0x50] sm:$0xff] %v294_v10  ;;  %297 = vst [vmem:[%s222_s10 + $0x58] sm:$0xff] %v296_v11 }
  0x2f PF: > { %p826_p0 = scmp.ge.s32.totalorder %s1162_s27, 1  ;;  %p308_p1 = scmp.lt.s32.totalorder %s1162_s27, 9 }
  0x31   : > { %p309_p2 = pnand %p826_p0, %p308_p1 }
  0x32   : > { %s315_s9 = sand.u32 (!%p309_p2), 1, %s1138_s21   ;;  %s1515_s13 = sand.u32 (!%p309_p2), 1, %s1130_s19  }
  0x33   : > { %312 = sbr.rel (%p309_p2) target bundleno = 671 (0x29f), region = 74  ;;  %s827_s28 = sshll.u32 (!%p309_p2), %s1515_s13, 6 }
  0x34   : > { %s946_s17 = smul.u32 (!%p309_p2), 96, %s315_s9  ;;  %s1303_s7 = sshll.u32 (!%p309_p2), %s1150_s24, 3 }
  0x35   : > { %p359_p3 = scmp.lt.s32.totalorder (!%p309_p2), %s1303_s7, 24  ;;  %p368_p4 = scmp.lt.s32.totalorder (!%p309_p2), %s1146_s23, 1 }
  0x36   : > { %s1318_s13 = scalar_lea.vmem (!%p309_p2), [#allocation3], %s946_s17  ;;  %s1320_s26 = scalar_lea.vmem (!%p309_p2), [#allocation4], %s827_s28 }
  0x37   : > { %p830_p5 = scmp.ne.s32.totalorder (!%p309_p2), %s1146_s23, 0 }
  0x3a   : > { %s360_s8 = scalar_select %p359_p3, %s1303_s7, 24 }
  0x3b   : > { %s1309_s12 = scalar_select %p368_p4, %s1146_s23, 1 }
  0x3c   : > { %s829_s29 = sshll.u32 %s360_s8, 3  ;;  %379 = sbr.rel (%p830_p5) target bundleno = 393 (0x189), region = 82  ;;  %vm388_vm0 = vcmask (!%p830_p5), 785408  }
  0x3d   : > { %s362_s6 = scalar_lea.vmem %s1507_s0, %s829_s29  ;;  %s370_s9 = scalar_lea.vmem %s1511_s4, %s1309_s12 }
  0x3e   : > { %v380_v12 = vld [vmem:[%s362_s6] sm:$0xff] (!%p830_p5)  ;;  %v382_v13 = vld [vmem:[%s362_s6 + $0x10] sm:$0xff] (!%p830_p5)  ;;  %v381_v14 = vld [vmem:[%s362_s6 + $0x8] sm:$0xff] (!%p830_p5) }
  0x3f   : > { %v389_v15 = vsel (!%p830_p5), %vm388_vm0, %v380_v12, 0.0  ;;  %v395_v16 = vsel (!%p830_p5), %vm388_vm0, %v382_v13, 0.0  ;;  %v383_v17 = vld [vmem:[%s362_s6 + $0x18] sm:$0xff] (!%p830_p5)  ;;  %v392_v18 = vsel (!%p830_p5), %vm388_vm0, %v381_v14, 0.0  ;;  %v384_v20 = vld [vmem:[%s362_s6 + $0x20] sm:$0xff] (!%p830_p5)  ;;  %v385_v21 = vld [vmem:[%s362_s6 + $0x28] sm:$0xff] (!%p830_p5) }
  0x40   : > { %390 = vadd.xlane.f32.xlu0 (!%p830_p5), %v389_v15  ;;  %396 = vadd.xlane.f32.xlu1 (!%p830_p5), %v395_v16  ;;  %v398_v19 = vsel (!%p830_p5), %vm388_vm0, %v383_v17, 0.0  ;;  %v401_v22 = vsel (!%p830_p5), %vm388_vm0, %v384_v20, 0.0  ;;  %v404_v23 = vsel (!%p830_p5), %vm388_vm0, %v385_v21, 0.0  ;;  %v386_v24 = vld [vmem:[%s362_s6 + $0x30] sm:$0xff] (!%p830_p5)  ;;  %v387_v25 = vld [vmem:[%s362_s6 + $0x38] sm:$0xff] (!%p830_p5) }
  0x41   : > { %v407_v26 = vsel (!%p830_p5), %vm388_vm0, %v386_v24, 0.0  ;;  %v410_v27 = vsel (!%p830_p5), %vm388_vm0, %v387_v25, 0.0 }
  0x44   : > { %393 = vadd.xlane.f32.xlu0 %v392_v18  ;;  %399 = vadd.xlane.f32.xlu1 %v398_v19 }
  0x48   : > { %402 = vadd.xlane.f32.xlu0 %v401_v22  ;;  %405 = vadd.xlane.f32.xlu1 %v404_v23 }
  0x4c   : > { %408 = vadd.xlane.f32.xlu0 %v407_v26  ;;  %411 = vadd.xlane.f32.xlu1 %v410_v27 }
  0xcd   : > { %v391_v28 = vpop.xlane.xlu0 %390  ;;  %v397_v29 = vpop.xlane.xlu1 %396 }
  0xce   : > { %v414_v30 = vmul.f32 0.010416667, %v391_v28  ;;  %v416_v31 = vmul.f32 0.010416667, %v397_v29  ;;  %v832_v29 = vld [vmem:[%s1509_s2] ss:$0 sm:$0xff] }
  0xd0   : > { %v1331_v32 = vsub.f32 %v380_v12, %v414_v30  ;;  %v1333_v33 = vsub.f32 %v382_v13, %v416_v31 }
  0xd1   : > { %v394_v34 = vpop.xlane.xlu0 %393  ;;  %v400_v35 = vpop.xlane.xlu1 %399 }
  0xd2   : > { %v415_v36 = vmul.f32 0.010416667, %v394_v34  ;;  %v417_v37 = vmul.f32 0.010416667, %v400_v35  ;;  %v430_v38 = vmul.f32 %v1331_v32, %v1331_v32  ;;  %v432_v39 = vmul.f32 %v1333_v33, %v1333_v33 }
  0xd4   : > { %v1339_v40 = vsub.f32 %v381_v14, %v415_v36  ;;  %v1341_v41 = vsub.f32 %v383_v17, %v417_v37  ;;  %v438_v42 = vsel %vm388_vm0, %v430_v38, 0.0  ;;  %v444_v45 = vsel %vm388_vm0, %v432_v39, 0.0 }
  0xd5   : > { %439 = vadd.xlane.f32.xlu0 %v438_v42  ;;  %v403_v43 = vpop.xlane.xlu0 %402  ;;  %v406_v44 = vpop.xlane.xlu1 %405 }
  0xd6   : > { %v418_v46 = vmul.f32 0.010416667, %v403_v43  ;;  %v419_v47 = vmul.f32 0.010416667, %v406_v44  ;;  %v431_v48 = vmul.f32 %v1339_v40, %v1339_v40  ;;  %v433_v49 = vmul.f32 %v1341_v41, %v1341_v41 }
  0xd8   : > { %v1349_v50 = vsub.f32 %v384_v20, %v418_v46  ;;  %v1351_v51 = vsub.f32 %v385_v21, %v419_v47  ;;  %v441_v52 = vsel %vm388_vm0, %v431_v48, 0.0  ;;  %v447_v55 = vsel %vm388_vm0, %v433_v49, 0.0 }
  0xd9   : > { %445 = vadd.xlane.f32.xlu0 %v444_v45  ;;  %442 = vadd.xlane.f32.xlu1 %v441_v52  ;;  %v409_v53 = vpop.xlane.xlu0 %408  ;;  %v412_v54 = vpop.xlane.xlu1 %411 }
  0xda   : > { %v420_v56 = vmul.f32 0.010416667, %v409_v53  ;;  %v421_v57 = vmul.f32 0.010416667, %v412_v54  ;;  %v434_v58 = vmul.f32 %v1349_v50, %v1349_v50  ;;  %v435_v59 = vmul.f32 %v1351_v51, %v1351_v51 }
  0xdc   : > { %v1359_v60 = vsub.f32 %v386_v24, %v420_v56  ;;  %v1361_v61 = vsub.f32 %v387_v25, %v421_v57  ;;  %v450_v62 = vsel %vm388_vm0, %v434_v58, 0.0  ;;  %v453_v63 = vsel %vm388_vm0, %v435_v59, 0.0  ;;  %v831_v24 = vld [vmem:[%s1508_s1] ss:$0 sm:$0xff] }
  0xdd   : > { %448 = vadd.xlane.f32.xlu1 %v447_v55  ;;  %451 = vadd.xlane.f32.xlu0 %v450_v62 }
  0xde   : > { %v436_v0 = vmul.f32 %v1359_v60, %v1359_v60  ;;  %v437_v1 = vmul.f32 %v1361_v61, %v1361_v61 }
  0xe0   : > { %v456_v2 = vsel %vm388_vm0, %v436_v0, 0.0  ;;  %v459_v3 = vsel %vm388_vm0, %v437_v1, 0.0 }
  0xe1   : > { %454 = vadd.xlane.f32.xlu1 %v453_v63  ;;  %457 = vadd.xlane.f32.xlu0 %v456_v2 }
  0xe5   : > { %460 = vadd.xlane.f32.xlu1 %v459_v3 }
 0x162   : > { %v440_v4 = vpop.xlane.xlu0 %439 }
 0x163   : > { %v462_v5 = vmul.f32 0.010416667, %v440_v4 }
 0x165   : > { %v470_v6 = vadd.f32 1e-05, %v462_v5 }
 0x166   : > { %v443_v7 = vpop.xlane.xlu1 %442  ;;  %v446_v8 = vpop.xlane.xlu0 %445 }
 0x167   : > { %1036 = vrsqrt.f32 %v470_v6  ;;  %v463_v9 = vmul.f32 0.010416667, %v443_v7  ;;  %v464_v10 = vmul.f32 0.010416667, %v446_v8 }
 0x169   : > { %v471_v11 = vadd.f32 1e-05, %v463_v9  ;;  %v472_v12 = vadd.f32 1e-05, %v464_v10 }
 0x16a   : > { %v449_v13 = vpop.xlane.xlu1 %448  ;;  %v452_v14 = vpop.xlane.xlu0 %451 }
 0x16b   : > { %1038 = vrsqrt.f32 %v471_v11  ;;  %v465_v15 = vmul.f32 0.010416667, %v449_v13  ;;  %v466_v16 = vmul.f32 0.010416667, %v452_v14 }
 0x16c   : > { %1040 = vrsqrt.f32 %v472_v12 }
 0x16d   : > { %v473_v17 = vadd.f32 1e-05, %v465_v15  ;;  %v474_v18 = vadd.f32 1e-05, %v466_v16 }
 0x16e   : > { %v455_v19 = vpop.xlane.xlu1 %454  ;;  %v458_v20 = vpop.xlane.xlu0 %457 }
 0x16f   : > { %1042 = vrsqrt.f32 %v473_v17  ;;  %v467_v21 = vmul.f32 0.010416667, %v455_v19  ;;  %v468_v22 = vmul.f32 0.010416667, %v458_v20 }
 0x170   : > { %1044 = vrsqrt.f32 %v474_v18 }
 0x171   : > { %v1037_v23 = vpop.eup %1036  ;;  %v475_v25 = vadd.f32 1e-05, %v467_v21  ;;  %v476_v26 = vadd.f32 1e-05, %v468_v22 }
 0x172   : > { %v486_v27 = vmul.f32 %v1037_v23, %v1331_v32  ;;  %v461_v28 = vpop.xlane.xlu1 %460 }
 0x173   : > { %1046 = vrsqrt.f32 %v475_v25  ;;  %v469_v30 = vmul.f32 0.010416667, %v461_v28 }
 0x174   : > { %v501_v31 = vmul.f32 %v831_v24, %v486_v27  ;;  %1048 = vrsqrt.f32 %v476_v26 }
 0x175   : > { %v1039_v34 = vpop.eup %1038  ;;  %v477_v35 = vadd.f32 1e-05, %v469_v30 }
 0x176   : > { %v1041_v36 = vpop.eup %1040  ;;  %v516_v37 = vadd.f32 %v832_v29, %v501_v31  ;;  %v487_v38 = vmul.f32 %v1039_v34, %v1339_v40 }
 0x177   : > { %v488_v39 = vmul.f32 %v1041_v36, %v1333_v33  ;;  %1050 = vrsqrt.f32 %v477_v35 }
 0x178   : > { %524 = vst.msk [vmem:[#allocation2] sm:$0xff] %vm388_vm0, %v516_v37  ;;  %v502_v32 = vmul.f32 %v831_v24, %v487_v38 }
 0x179   : > { %v1043_v42 = vpop.eup %1042  ;;  %v503_v43 = vmul.f32 %v831_v24, %v488_v39 }
 0x17a   : > { %v1045_v44 = vpop.eup %1044  ;;  %v517_v45 = vadd.f32 %v832_v29, %v502_v32  ;;  %v489_v46 = vmul.f32 %v1043_v42, %v1341_v41 }
 0x17b   : > { %v518_v47 = vadd.f32 %v832_v29, %v503_v43  ;;  %v490_v48 = vmul.f32 %v1045_v44, %v1349_v50 }
 0x17c   : > { %525 = vst.msk [vmem:[#allocation2 + $0x8] sm:$0xff] %vm388_vm0, %v517_v45  ;;  %v504_v49 = vmul.f32 %v831_v24, %v489_v46 }
 0x17d   : > { %v1047_v52 = vpop.eup %1046  ;;  %526 = vst.msk [vmem:[#allocation2 + $0x10] sm:$0xff] %vm388_vm0, %v518_v47  ;;  %v505_v33 = vmul.f32 %v831_v24, %v490_v48 }
 0x17e   : > { %v1049_v40 = vpop.eup %1048  ;;  %v519_v53 = vadd.f32 %v832_v29, %v504_v49  ;;  %v491_v54 = vmul.f32 %v1047_v52, %v1351_v51 }
 0x17f   : > { %v520_v55 = vadd.f32 %v832_v29, %v505_v33  ;;  %v492_v56 = vmul.f32 %v1049_v40, %v1359_v60 }
 0x180   : > { %527 = vst.msk [vmem:[#allocation2 + $0x18] sm:$0xff] %vm388_vm0, %v519_v53  ;;  %v506_v41 = vmul.f32 %v831_v24, %v491_v54 }
 0x181   : > { %v1051_v57 = vpop.eup %1050  ;;  %528 = vst.msk [vmem:[#allocation2 + $0x20] sm:$0xff] %vm388_vm0, %v520_v55  ;;  %v507_v50 = vmul.f32 %v831_v24, %v492_v56 }
 0x182   : > { %v521_v58 = vadd.f32 %v832_v29, %v506_v41  ;;  %v493_v59 = vmul.f32 %v1051_v57, %v1361_v61 }
 0x183   : > { %v522_v62 = vadd.f32 %v832_v29, %v507_v50 }
 0x184   : > { %529 = vst.msk [vmem:[#allocation2 + $0x28] sm:$0xff] %vm388_vm0, %v521_v58  ;;  %v508_v63 = vmul.f32 %v831_v24, %v493_v59 }
 0x185   : > { %530 = vst.msk [vmem:[#allocation2 + $0x30] sm:$0xff] %vm388_vm0, %v522_v62 }
 0x186   : > { %v523_v51 = vadd.f32 %v832_v29, %v508_v63 }
 0x188   : > { %531 = vst.msk [vmem:[#allocation2 + $0x38] sm:$0xff] %vm388_vm0, %v523_v51 }
 0x189 PF: > { %v540_v60 = vld [vmem:[%s1318_s13] sm:$0xff]  ;;  %v541_v0 = vld [vmem:[%s1318_s13 + $0x8] sm:$0xff]  ;;  %v542_v1 = vld [vmem:[%s1318_s13 + $0x10] sm:$0xff]  ;;  %vm559_vm1 = vcmask 785408   ;;  %s1525_s8 = sand.u32 1, %s1130_s19   ;;  %s706_s29 = ssub.s32 (%p1277_p10), 25, %s1303_s7 }
 0x18a   : > { %v909_v61 = vpack.c.bf16 %v541_v0, %v540_v60  ;;  %v543_v2 = vld [vmem:[%s1318_s13 + $0x18] sm:$0xff]  ;;  %v544_v4 = vld [vmem:[%s1318_s13 + $0x20] sm:$0xff]  ;;  %v545_v5 = vld [vmem:[%s1318_s13 + $0x28] sm:$0xff]  ;;  %s1428_s12 = scalar_lea.sflag [#allocation5], %s1525_s8  ;;  %p707_p6 = scmp.lt.s32.totalorder (%p1277_p10), %s706_s29, 8 }
 0x18b   : > { %v913_v3 = vpack.c.bf16 %v543_v2, %v542_v1  ;;  %v532_v6 = vld [vmem:[#allocation2] sm:$0xff]  ;;  %v917_v8 = vpack.c.bf16 %v545_v5, %v544_v4  ;;  %v546_v9 = vld [vmem:[%s1318_s13 + $0x30] sm:$0xff]  ;;  %v547_v10 = vld [vmem:[%s1318_s13 + $0x38] sm:$0xff] }
 0x18c   : > { %910 = vmatprep.subr.bf16.mxu0 %v909_v61  ;;  %933 = vmatprep.subr.bf16.mxu1 %v909_v61  ;;  %v536_v7 = vld [vmem:[#allocation2 + $0x20] sm:$0xff]  ;;  %v921_v11 = vpack.c.bf16 %v547_v10, %v546_v9  ;;  %v549_v13 = vld [vmem:[%s1318_s13 + $0x48] sm:$0xff]  ;;  %v550_v15 = vld [vmem:[%s1318_s13 + $0x50] sm:$0xff] }
 0x18d   : > { %912 = vmatpush3.bf16.msra.mxu0 %v909_v61  ;;  %939 = vmatpush3.bf16.msra.mxu1 %v909_v61  ;;  %v548_v12 = vld [vmem:[%s1318_s13 + $0x40] sm:$0xff]  ;;  %v551_v16 = vld [vmem:[%s1318_s13 + $0x58] sm:$0xff]  ;;  %v533_v18 = vld [vmem:[#allocation2 + $0x8] sm:$0xff] }
 0x18e   : > { %914 = vmatprep.subr.bf16.mxu0 %v913_v3  ;;  %934 = vmatprep.subr.bf16.mxu1 %v913_v3  ;;  %v925_v14 = vpack.c.bf16 %v549_v13, %v548_v12  ;;  %v929_v17 = vpack.c.bf16 %v551_v16, %v550_v15  ;;  %v537_v19 = vld [vmem:[#allocation2 + $0x28] sm:$0xff]  ;;  %v534_v20 = vld [vmem:[#allocation2 + $0x10] sm:$0xff]  ;;  %v535_v22 = vld [vmem:[#allocation2 + $0x18] sm:$0xff] }
 0x18f   : > { %897 = vmatprep.mubr.msk.f32.mxu0 %vm559_vm1, %v532_v6  ;;  %903 = vmatprep.mubr.msk.f32.mxu1 %vm559_vm1, %v536_v7  ;;  %v538_v21 = vld [vmem:[#allocation2 + $0x30] sm:$0xff]  ;;  %v539_v23 = vld [vmem:[#allocation2 + $0x38] sm:$0xff]  ;;  %v833_v24 = vld [vmem:[%s370_s9] ss:$0 sm:$0xff] }
 0x191   : > { %916 = vmatpush3.bf16.msra.mxu0 %v913_v3  ;;  %940 = vmatpush3.bf16.msra.mxu1 %v913_v3 }
 0x192   : > { %918 = vmatprep.subr.bf16.mxu0 %v917_v8  ;;  %935 = vmatprep.subr.bf16.mxu1 %v917_v8 }
 0x195   : > { %920 = vmatpush3.bf16.msra.mxu0 %v917_v8  ;;  %941 = vmatpush3.bf16.msra.mxu1 %v917_v8 }
 0x196   : > { %922 = vmatprep.subr.bf16.mxu0 %v921_v11  ;;  %936 = vmatprep.subr.bf16.mxu1 %v921_v11 }
 0x199   : > { %924 = vmatpush3.bf16.msra.mxu0 %v921_v11  ;;  %942 = vmatpush3.bf16.msra.mxu1 %v921_v11 }
 0x19a   : > { %926 = vmatprep.subr.bf16.mxu0 %v925_v14  ;;  %937 = vmatprep.subr.bf16.mxu1 %v925_v14 }
 0x19d   : > { %928 = vmatpush3.bf16.msra.mxu0 %v925_v14  ;;  %943 = vmatpush3.bf16.msra.mxu1 %v925_v14 }
 0x19e   : > { %930 = vmatprep.subr.bf16.mxu0 %v929_v17  ;;  %938 = vmatprep.subr.bf16.mxu1 %v929_v17 }
 0x1a1   : > { %932 = vmatpush3.bf16.msra.mxu0 %v929_v17  ;;  %944 = vmatpush3.bf16.msra.mxu1 %v929_v17 }
 0x1a4   : > { %898 = vmatmul.mubr.msk.f32.vlgmr.msra.gmra.mrb[0].mxu0 %vm559_vm1, %v533_v18  ;;  %904 = vmatmul.mubr.msk.f32.vlgmr.msra.gmra.mrb[0].mxu1 %vm559_vm1, %v537_v19 }
 0x1a5   : > { %900 = vmatprep.mubr.msk.f32.mxu0 %vm559_vm1, %v534_v20  ;;  %906 = vmatprep.mubr.msk.f32.mxu1 %vm559_vm1, %v538_v21 }
 0x1a8   : > { %901 = vmatmul.mubr.msk.f32.gmra.mrb[2].mxu0 %vm559_vm1, %v535_v22  ;;  %907 = vmatmul.mubr.msk.f32.gmra.mrb[2].mxu1 %vm559_vm1, %v539_v23 }
 0x277   : > { %v899_v25 = vpop.f32.mrb[0].mxu0  ;;  %v905_v26 = vpop.f32.mrb[0].mxu1 }
 0x278   : > { %v656_v27 = vadd.f32 %v899_v25, %v833_v24  ;;  %v676_v28 = vadd.f32 %v905_v26, %v833_v24  ;;  %v650_v29 = vpop.f32.mrb[1].mxu0  ;;  %v670_v30 = vpop.f32.mrb[1].mxu1 }
 0x279   : > { %v651_v31 = vadd.f32 %v833_v24, %v650_v29  ;;  %v671_v34 = vadd.f32 %v833_v24, %v670_v30  ;;  %704 = sbr.rel (!%p1277_p10) target bundleno = 671 (0x29f), region = 86 }
 0x27a   : > { %690 = vst [vmem:[%s1320_s26 + $0x8] sm:$0xff] %v656_v27  ;;  %694 = vst [vmem:[%s1320_s26 + $0x28] sm:$0xff] %v676_v28 }
 0x27b   : > { %689 = vst [vmem:[%s1320_s26] sm:$0xff] %v651_v31  ;;  %693 = vst [vmem:[%s1320_s26 + $0x20] sm:$0xff] %v671_v34  ;;  %v902_v35 = vpop.f32.mrb[2].mxu0  ;;  %v908_v36 = vpop.f32.mrb[2].mxu1 }
 0x27c   : > { %v666_v37 = vadd.f32 %v902_v35, %v833_v24  ;;  %v686_v38 = vadd.f32 %v908_v36, %v833_v24  ;;  %v660_v39 = vpop.f32.mrb[3].mxu0  ;;  %v680_v32 = vpop.f32.mrb[3].mxu1 }
 0x27d   : > { %v661_v42 = vadd.f32 %v833_v24, %v660_v39  ;;  %v681_v43 = vadd.f32 %v833_v24, %v680_v32 }
 0x27e   : > { %692 = vst [vmem:[%s1320_s26 + $0x18] sm:$0xff] %v666_v37  ;;  %696 = vst [vmem:[%s1320_s26 + $0x38] sm:$0xff] %v686_v38 }
 0x27f   : > { %691 = vst [vmem:[%s1320_s26 + $0x10] sm:$0xff] %v661_v42  ;;  %695 = vst [vmem:[%s1320_s26 + $0x30] sm:$0xff] %v681_v43 }
 0x280   : > { %s1543_s29 = smov (!%p707_p6, %s706_s29), 8 }
 0x281   : > { %s1433_s10 = sshll.u32 %s1543_s29, 7 }
 0x282   : > { %s711_s21 = ssub.s32 1024, %s1433_s10 }
 0x283   : > { %712 = vsyncadd %s1428_s12, %s711_s21  ;;  %p845_p7 = scmp.ne.s32.totalorder %s1433_s10, 0  ;;  %s852_s9 = sshll.u32 %s1150_s24, 4 }
 0x284   : > { %s715_s14 = sadd.s32 %s1146_s23, %s852_s9  ;;  %s719_s3 = sshll.u32 %s1320_s26, 4  ;;  %s1441_s3 = int_to_ptr.vmem [resolvable:$true] %s719_s3 }
 0x285   : > { %s847_s30 = sshll.u32 %s715_s14, 7  ;;  %s1052_s13 = scalar_lea.vmem %s1441_s3, %s1433_s10 }
 0x286   : > { %s1446_s17 = scalar_lea.hbm %s1512_s5, %s847_s30  ;;  %p1053_p8 = scmp.ne.s32.totalorder %s1441_s3, %s1052_s13 }
 0x287   : > { %s1164_s28 = smov [#allocation4]  }
 0x288   : > { %p1054_p9 = pnand %p1053_p8, %p845_p7  ;;  %s1056_s24 = sshll.u32 %s1164_s28, 4  ;;  %s1057_s24 = int_to_ptr.vmem [resolvable:$false] %s1056_s24 }
 0x289   : > { %s1058_s23 = scalar_lea.vmem %s1057_s24, 2048  ;;  %p1059_p11 = scmp.lt.s32.totalorder %s1441_s3, %s1057_s24 }
 0x28a   : > { %p1055_p10 = pneg %p1054_p9  ;;  %p1060_p13 = scmp.lt.s32.totalorder %s1058_s23, %s1052_s13 }
 0x28c   : > { %p1061_p0 = por %p1060_p13, %p1059_p11 }
 0x28e   : > { %p1062_p1 = pnand %p1061_p0, %p1055_p10 }
 0x290   : > { %1065 = shalt.err (!%p1062_p1)
}
 0x291   : > { %s1066_s26 = scalar_lea.hbm %s1446_s17, %s1433_s10  ;;  %s1070_s21 = scalar_lea.hbm %s1512_s5, 6400 }
 0x292   : > { %p1067_p2 = scmp.ne.s32.totalorder %s1446_s17, %s1066_s26  ;;  %p1071_p5 = scmp.lt.u32.totalorder %s1446_s17, %s1512_s5 }
 0x293   : > { %p1072_p6 = scmp.lt.u32.totalorder %s1070_s21, %s1066_s26  ;;  %p1074_p9 = scmp.lt.u32.totalorder %s1066_s26, %s1446_s17 }
 0x294   : > { %p1068_p3 = pnand %p1067_p2, %p845_p7 }
 0x295   : > { %p1073_p8 = por %p1072_p6, %p1071_p5 }
 0x296   : > { %p1069_p4 = pneg %p1068_p3 }
 0x297   : > { %p1075_p10 = por %p1074_p9, %p1073_p8 }
 0x299   : > { %p1076_p11 = pnand %p1075_p10, %p1069_p4 }
 0x29b   : > { %1079 = shalt.err (!%p1076_p11)
}
 0x29c   : > { %s1165_s30 = smov 128   ;;  %s1166_s7 = smov 256  }
 0x29d   : > { %s1167_s6 = smov 8  }
 0x29e   : > { %725 = dma.vmem_to_hbm [thread:$0]  (%p845_p7), %s1441_s3, %s1433_s10, %s1446_s17, %s1428_s12, %s1165_s30, %s1166_s7, %s1167_s6  }
 0x29f PF: > { %p952_p13 = scmp.ge.s32.totalorder %s1162_s27, 2  ;;  %s734_s13 = sand.u32 1, %s1126_s18  }
 0x2a0   : > { %s735_s28 = scalar_lea.sflag [#allocation5], %s734_s13 }
 0x2a1   : > { %p949_p0 = pnand %p952_p13, %p1284_p12 }
 0x2a3   : > { %1121 = dma.done.wait (!%p949_p0), %s735_s28, 1024  }
 0x2a4   : > { %1123 = vsyncadd (!%p949_p0), %s735_s28, 4294966272  ;;  %s18_s27 = sadd.s32 1, %s1162_s27   ;;  %s1526_s24 = sld [smem:[#allocation7_spill]] }
 0x2a5   : > { %p15_p1 = scmp.ge.s32.totalorder %s18_s27, 10   ;;  %s1527_s12 = sld [smem:[#allocation8_spill]] }
 0x2a6   : > { %s1528_s26 = sld [smem:[#allocation9_spill]]  ;;  %s1529_s18 = smov %s1130_s19 }
 0x2a7   : > { %s1530_s19 = smov %s1134_s20  ;;  %s1531_s20 = smov %s1282_s15 }
 0x2a8   : > { %s1532_s21 = smov %s1142_s22  ;;  %s1533_s22 = smov %s1271_s11 }
 0x2a9   : > { %s1534_s23 = smov %s1154_s25  ;;  %17 = sbr.rel (!%p15_p1) target bundleno = 8 (0x8), region = 128 }
 0x2ab   : > { %s1535_s25 = smov %s1527_s12 }
 0x2b0   :  { %740 = vsyncpa [#allocation5], 1 }
 0x2b1   :  { %742 = vsyncpa [#allocation5 + $0x1], 1 }

</bundles_post_ra>
